<compile_context>
chip_gen: v6e
topology: v6e:2x2x1
jax: 0.10.0
libtpu: 0.0.40
codegen_flags: <defaults>
</compile_context>

<pallas_src>
import functools

import jax
import jax.numpy as jnp
from jax.experimental import pallas as pl
from jax.experimental.pallas import tpu as pltpu


def _round_up(x, m):
    return (x + m - 1) // m * m


def _one_hot_logits(idx_ref, table_ref):
    """Embedding gather for one tile as a one-hot matmul on the (idle) MXU."""
    tile_n = idx_ref.shape[0]
    vp = table_ref.shape[1]
    col = jax.lax.broadcasted_iota(jnp.int32, (tile_n, vp), 1)
    one_hot = col == idx_ref[...]                         # (tile_n, Vp) bool
    # f32 one-hot @ f32 table; HIGHEST precision keeps the 0/1 row selection
    # faithful to the f32 table values (review correctness note).
    logits = jnp.dot(one_hot.astype(jnp.float32), table_ref[...],
                     preferred_element_type=jnp.float32,
                     precision=jax.lax.Precision.HIGHEST)
    return one_hot, col, logits


def _bigram_logits_kernel(idx_ref, table_ref, logits_ref):
    # Inference path: pure embedding gather, no cross-entropy machinery.
    _, _, logits = _one_hot_logits(idx_ref, table_ref)
    logits_ref[...] = logits


def _bigram_loss_kernel(idx_ref, tgt_ref, table_ref, lse_ref,
                        logits_ref, nll_ref, *, n_valid):
    # idx_ref:    (tile_n, 1)  int32   VMEM  token ids for this tile
    # tgt_ref:    (tile_n, 1)  int32   VMEM  targets for this tile
    # table_ref:  (Vp, Vp)     float32 VMEM  resident across grid steps
    # lse_ref:    (1, Vp)      float32 VMEM  resident per-vocab-row logsumexp
    # logits_ref: (tile_n, Vp) float32 VMEM  out
    # nll_ref:    (1, 1)       float32 VMEM  out, per-block partial NLL sum
    one_hot, col, logits = _one_hot_logits(idx_ref, table_ref)
    logits_ref[...] = logits

    # Per-row logsumexp: select the precomputed per-vocab-row value with the
    # same one-hot mask (VPU select + XLU lane reduce, off the critical path).
    lse = jnp.sum(jnp.where(one_hot, lse_ref[...], 0.0),
                  axis=-1, keepdims=True)                 # (tile_n, 1)
    tgt_logit = jnp.sum(jnp.where(col == tgt_ref[...], logits, 0.0),
                        axis=-1, keepdims=True)           # (tile_n, 1)

    tile_n = logits.shape[0]
    base = pl.program_id(0) * tile_n
    row = base + jax.lax.broadcasted_iota(jnp.int32, (tile_n, 1), 0)
    nll = jnp.where(row < n_valid, lse - tgt_logit, 0.0)  # mask padded tail rows
    nll_ref[...] = jnp.sum(nll, axis=0, keepdims=True)    # (1, 1) partial sum


def bigram_forward(idx, table, targets=None, tile_n=512):
    """Pallas equivalent of BigramLanguageModel.forward -> (logits, loss)."""
    B, T = idx.shape
    V = table.shape[0]
    N = B * T

    Vp = _round_up(V, 128)                                # lane-dense vocab dim
    tile_n = max(8, _round_up(min(tile_n, N), 8))         # rows per grid step
    n_pad = _round_up(N, tile_n)
    nb = n_pad // tile_n

    table_f32 = table.astype(jnp.float32)
    if table_f32.shape == (Vp, Vp):
        table_pad = table_f32
    else:
        # Zero padding is safe: padded rows are never selected (idx < V) and
        # padded columns are sliced off before returning.
        table_pad = jnp.zeros((Vp, Vp), jnp.float32).at[:V, :V].set(table_f32)

    idx_flat = idx.reshape(N).astype(jnp.int32)
    if n_pad != N:
        idx_flat = jnp.zeros((n_pad,), jnp.int32).at[:N].set(idx_flat)
    idx_flat = idx_flat.reshape(n_pad, 1)

    idx_spec = pl.BlockSpec((tile_n, 1), lambda b: (b, 0))
    table_spec = pl.BlockSpec((Vp, Vp), lambda b: (0, 0))     # fetched once, resident
    logits_spec = pl.BlockSpec((tile_n, Vp), lambda b: (b, 0))

    compiler_params = pltpu.CompilerParams(
        dimension_semantics=("parallel",),   # independent blocks -> megacore OK
        vmem_limit_bytes=32 * 1024 * 1024,
    )

    if targets is None:
        logits_pad = pl.pallas_call(
            _bigram_logits_kernel,
            out_shape=jax.ShapeDtypeStruct((n_pad, Vp), jnp.float32),
            grid_spec=pltpu.PrefetchScalarGridSpec(
                num_scalar_prefetch=0,
                grid=(nb,),
                in_specs=[idx_spec, table_spec],
                out_specs=logits_spec,
            ),
            compiler_params=compiler_params,
        )(idx_flat, table_pad)
        loss = None
    else:
        tgt_flat = targets.reshape(N).astype(jnp.int32)
        if n_pad != N:
            tgt_flat = jnp.zeros((n_pad,), jnp.int32).at[:N].set(tgt_flat)
        tgt_flat = tgt_flat.reshape(n_pad, 1)

        # logsumexp depends only on the vocab row -> one O(V*V) pass here
        # instead of O(N*Vp) exp/log inside the kernel.
        lse_tab = jax.nn.logsumexp(table_f32, axis=-1)                 # (V,)
        lse_row = jnp.zeros((1, Vp), jnp.float32).at[0, :V].set(lse_tab)

        logits_pad, nll_parts = pl.pallas_call(
            functools.partial(_bigram_loss_kernel, n_valid=N),
            out_shape=(
                jax.ShapeDtypeStruct((n_pad, Vp), jnp.float32),
                jax.ShapeDtypeStruct((nb, 1), jnp.float32),
            ),
            grid_spec=pltpu.PrefetchScalarGridSpec(
                num_scalar_prefetch=0,
                grid=(nb,),
                in_specs=[idx_spec, idx_spec, table_spec,
                          pl.BlockSpec((1, Vp), lambda b: (0, 0))],
                out_specs=(logits_spec,
                           pl.BlockSpec((1, 1), lambda b: (b, 0))),
            ),
            compiler_params=compiler_params,
        )(idx_flat, tgt_flat, table_pad, lse_row)
        loss = jnp.sum(nll_parts) / N          # mean over the true N rows only

    # These slices are no-ops when tile_n | N and V % 128 == 0.
    logits = logits_pad
    if n_pad != N:
        logits = logits[:N]
    if Vp != V:
        logits = logits[:, :V]
    logits = logits.reshape(B, T, V)
    return logits, loss
    # TODO(synk): generate() (autoregressive multinomial sampling loop) is
    # host-side control flow and is intentionally not implemented as a kernel.


def _reference_forward(idx, table, targets):
    logits = table[idx]                                  # (B, T, V)
    B, T, V = logits.shape
    flat = logits.reshape(B * T, V)
    tgt = targets.reshape(B * T)
    logz = jax.nn.logsumexp(flat, axis=-1)
    nll = logz - jnp.take_along_axis(flat, tgt[:, None], axis=-1)[:, 0]
    return logits, jnp.mean(nll)


if __name__ == "__main__":
    key = jax.random.PRNGKey(0)
    k_tab, k_idx, k_tgt = jax.random.split(key, 3)

    vocab_size = 64   # stand-in for len(set(text))
    B, T = 2, 8

    # nn.Embedding(vocab_size, vocab_size) default init ~ N(0, 1).
    table = jax.random.normal(k_tab, (vocab_size, vocab_size), dtype=jnp.float32)
    idx = jax.random.randint(k_idx, (B, T), 0, vocab_size, dtype=jnp.int32)
    targets = jax.random.randint(k_tgt, (B, T), 0, vocab_size, dtype=jnp.int32)

    ref_logits, ref_loss = _reference_forward(idx, table, targets)

    # Default tile (clamps to N=16 -> single grid block).
    logits, loss = bigram_forward(idx, table, targets)
    jax.block_until_ready((logits, loss))
    assert logits.shape == (B, T, vocab_size)
    assert jnp.allclose(logits, ref_logits, atol=1e-4)
    assert jnp.allclose(loss, ref_loss, atol=1e-4)

    # Small tile to exercise the multi-block pipelined grid + row masking.
    logits2, loss2 = bigram_forward(idx, table, targets, tile_n=8)
    jax.block_until_ready((logits2, loss2))
    assert jnp.allclose(logits2, ref_logits, atol=1e-4)
    assert jnp.allclose(loss2, ref_loss, atol=1e-4)

    # targets=None path (logits only, no cross-entropy work).
    logits_only, loss_none = bigram_forward(idx, table, None)
    jax.block_until_ready(logits_only)
    assert loss_none is None
    assert jnp.allclose(logits_only, ref_logits, atol=1e-4)

    print("KERNEL_OK")
</pallas_src>

<mosaic_0001>
module attributes {stable_mosaic.version = 11 : i64} {
  func.func @_bigram_loss_kernel(%arg0: i32, %arg1: memref<16x1xi32, #tpu.memory_space<vmem>>, %arg2: memref<16x1xi32, #tpu.memory_space<vmem>>, %arg3: memref<128x128xf32, #tpu.memory_space<vmem>>, %arg4: memref<1x128xf32, #tpu.memory_space<vmem>>, %arg5: memref<16x128xf32, #tpu.memory_space<vmem>>, %arg6: memref<1x1xf32, #tpu.memory_space<vmem>>) attributes {dimension_semantics = [#tpu.dimension_semantics<parallel>], iteration_bounds = array<i64: 1>, scalar_prefetch = 0 : i64, scratch_operands = 0 : i64, tpu.core_type = #tpu.core_type<tc>, window_params = [{transform_indices = @transform_0, window_bounds = array<i64: 16, 1>}, {transform_indices = @transform_1, window_bounds = array<i64: 16, 1>}, {pipeline_mode = #tpu.pipeline_mode<synchronous>, transform_indices = @transform_2, window_bounds = array<i64: 128, 128>}, {pipeline_mode = #tpu.pipeline_mode<synchronous>, transform_indices = @transform_3, window_bounds = array<i64: 1, 128>}, {transform_indices = @transform_4, window_bounds = array<i64: 16, 128>}, {transform_indices = @transform_5, window_bounds = array<i64: 1, 1>}]} {
    %0 = tpu.iota {dimensions = array<i32: 1>} : vector<16x128xi32>
    %c0 = arith.constant 0 : index
    %c0_0 = arith.constant 0 : index
    %1 = vector.load %arg1[%c0, %c0_0] : memref<16x1xi32, #tpu.memory_space<vmem>>, vector<16x1xi32>
    %2 = vector.broadcast %1 : vector<16x1xi32> to vector<16x128xi32>
    %3 = arith.cmpi eq, %0, %2 : vector<16x128xi32>
    %4 = arith.extui %3 : vector<16x128xi1> to vector<16x128xi32>
    %5 = arith.sitofp %4 : vector<16x128xi32> to vector<16x128xf32>
    %c0_1 = arith.constant 0 : index
    %c0_2 = arith.constant 0 : index
    %6 = vector.load %arg3[%c0_1, %c0_2] : memref<128x128xf32, #tpu.memory_space<vmem>>, vector<128x128xf32>
    %cst = arith.constant dense<0.000000e+00> : vector<16x128xf32>
    %7 = tpu.matmul %5, %6, %cst {dimension_numbers = #tpu.dot_dimension_numbers<[1], [0], [0], [1], [0, 0, 1, 1], [], []>, precision = #tpu.contract_precision<fp32>} : vector<16x128xf32>, vector<128x128xf32>, vector<16x128xf32> -> vector<16x128xf32>
    %c0_3 = arith.constant 0 : index
    %c0_4 = arith.constant 0 : index
    %8 = vector.load %arg5[%c0_3, %c0_4] : memref<16x128xf32, #tpu.memory_space<vmem>>, vector<16x128xf32>
    tpu.vector_store %arg5[%c0_3, %c0_4], %7 {strides = array<i32>} : memref<16x128xf32, #tpu.memory_space<vmem>>, vector<16x128xf32>,
    %c0_5 = arith.constant 0 : index
    %c0_6 = arith.constant 0 : index
    %9 = vector.load %arg4[%c0_5, %c0_6] : memref<1x128xf32, #tpu.memory_space<vmem>>, vector<1x128xf32>
    %cst_7 = arith.constant 0.000000e+00 : f32
    %10 = vector.shape_cast %9 : vector<1x128xf32> to vector<1x128xf32>
    %11 = vector.broadcast %10 : vector<1x128xf32> to vector<16x128xf32>
    %12 = vector.broadcast %cst_7 : f32 to vector<16x128xf32>
    %13 = arith.select %3, %11, %12 : vector<16x128xi1>, vector<16x128xf32>
    %cst_8 = arith.constant dense<0.000000e+00> : vector<16xf32>
    %14 = vector.multi_reduction <add>, %13, %cst_8 [1] : vector<16x128xf32> to vector<16xf32>
    %15 = vector.shape_cast %14 : vector<16xf32> to vector<16x1xf32>
    %c0_9 = arith.constant 0 : index
    %c0_10 = arith.constant 0 : index
    %16 = vector.load %arg2[%c0_9, %c0_10] : memref<16x1xi32, #tpu.memory_space<vmem>>, vector<16x1xi32>
    %17 = vector.broadcast %16 : vector<16x1xi32> to vector<16x128xi32>
    %18 = arith.cmpi eq, %0, %17 : vector<16x128xi32>
    %cst_11 = arith.constant 0.000000e+00 : f32
    %19 = vector.broadcast %cst_11 : f32 to vector<16x128xf32>
    %20 = arith.select %18, %7, %19 : vector<16x128xi1>, vector<16x128xf32>
    %cst_12 = arith.constant dense<0.000000e+00> : vector<16xf32>
    %21 = vector.multi_reduction <add>, %20, %cst_12 [1] : vector<16x128xf32> to vector<16xf32>
    %22 = vector.shape_cast %21 : vector<16xf32> to vector<16x1xf32>
    %c16_i32 = arith.constant 16 : i32
    %23 = arith.muli %arg0, %c16_i32 : i32
    %24 = tpu.iota {dimensions = array<i32: 0>} : vector<16x1xi32>
    %25 = vector.broadcast %23 : i32 to vector<16x1xi32>
    %26 = arith.addi %25, %24 : vector<16x1xi32>
    %c16_i32_13 = arith.constant 16 : i32
    %27 = vector.broadcast %c16_i32_13 : i32 to vector<16x1xi32>
    %28 = arith.cmpi slt, %26, %27 : vector<16x1xi32>
    %29 = arith.subf %15, %22 : vector<16x1xf32>
    %cst_14 = arith.constant 0.000000e+00 : f32
    %30 = vector.broadcast %cst_14 : f32 to vector<16x1xf32>
    %31 = arith.select %28, %29, %30 : vector<16x1xi1>, vector<16x1xf32>
    %cst_15 = arith.constant dense<0.000000e+00> : vector<1xf32>
    %32 = vector.multi_reduction <add>, %31, %cst_15 [0] : vector<16x1xf32> to vector<1xf32>
    %33 = vector.shape_cast %32 : vector<1xf32> to vector<1x1xf32>
    %c0_16 = arith.constant 0 : index
    %c0_17 = arith.constant 0 : index
    %34 = vector.load %arg6[%c0_16, %c0_17] : memref<1x1xf32, #tpu.memory_space<vmem>>, vector<1x1xf32>
    tpu.vector_store %arg6[%c0_16, %c0_17], %33 {strides = array<i32>} : memref<1x1xf32, #tpu.memory_space<vmem>>, vector<1x1xf32>,
    return
  }
  func.func @transform_0(%arg0: i32) -> (i32, i32) {
    %c0_i32 = arith.constant 0 : i32
    %c0_i32_0 = arith.constant 0 : i32
    return %arg0, %c0_i32 : i32, i32
  }
  func.func @transform_1(%arg0: i32) -> (i32, i32) {
    %c0_i32 = arith.constant 0 : i32
    %c0_i32_0 = arith.constant 0 : i32
    return %arg0, %c0_i32 : i32, i32
  }
  func.func @transform_2(%arg0: i32) -> (i32, i32) {
    %c0_i32 = arith.constant 0 : i32
    %c0_i32_0 = arith.constant 0 : i32
    %c0_i32_1 = arith.constant 0 : i32
    return %c0_i32, %c0_i32_0 : i32, i32
  }
  func.func @transform_3(%arg0: i32) -> (i32, i32) {
    %c0_i32 = arith.constant 0 : i32
    %c0_i32_0 = arith.constant 0 : i32
    %c0_i32_1 = arith.constant 0 : i32
    return %c0_i32, %c0_i32_0 : i32, i32
  }
  func.func @transform_4(%arg0: i32) -> (i32, i32) {
    %c0_i32 = arith.constant 0 : i32
    %c0_i32_0 = arith.constant 0 : i32
    return %arg0, %c0_i32 : i32, i32
  }
  func.func @transform_5(%arg0: i32) -> (i32, i32) {
    %c0_i32 = arith.constant 0 : i32
    %c0_i32_0 = arith.constant 0 : i32
    return %arg0, %c0_i32 : i32, i32
  }
}

</mosaic_0001>

<bundles_post_ra>
// kernel: tpu_custom_call.1
= control target key start
LH: loop header
LB: loop body
LE: loop exit
PB: predicated region body
PF: predicated region fallthrough
CT: control target
= control target key end

     0   :  { %11 = vsyncpa [#allocation3], 0  ;;  %s1671_s0 = inlined_call_operand.vmem [shape: s32[16,1], index: 0, kind: input, shape index: {}]   ;;  %s1672_s1 = inlined_call_operand.vmem [shape: s32[16,1], index: 1, kind: input, shape index: {}]   ;;  %s1673_s2 = inlined_call_operand.hbm [shape: f32[128,128], index: 2, kind: input, shape index: {}]   ;;  %s1674_s3 = inlined_call_operand.vmem [shape: f32[1,128], index: 3, kind: input, shape index: {}]   ;;  %s1675_s4 = inlined_call_operand.hbm [shape: f32[16,128], index: 4, kind: output, shape index: {0}]   ;;  %s1676_s5 = inlined_call_operand.hbm [shape: f32[1,1], index: 5, kind: output, shape index: {1}]  }
   0x1   :  { %12 = vsyncpa [#allocation4], 0 }
   0x2   :  { %13 = vsyncpa [#allocation7], 0  ;;  %s1238_s18 = smov [#allocation2]  }
   0x3   :  { %s23_s19 = sshll.u32 %s1238_s18, 4  ;;  %s24_s19 = int_to_ptr.vmem [resolvable:$true] %s23_s19 }
   0x4   :  { %s1180_s20 = scalar_lea.vmem %s24_s19, 2048  ;;  %p1185_p1 = scmp.lt.s32.totalorder %s24_s19, %s24_s19 }
   0x5   :  { %p1181_p0 = scmp.ne.s32.totalorder %s24_s19, %s1180_s20  ;;  %p1186_p2 = scmp.lt.s32.totalorder %s1180_s20, %s1180_s20 }
   0x7   :  { %p1187_p3 = por %p1186_p2, %p1185_p1 }
   0x9   :  { %p1188_p4 = pnand %p1187_p3, %p1181_p0 }
   0xb   :  { %1191 = shalt.err (!%p1188_p4)
}
   0xc   :  { %s1239_s21 = smov 128   ;;  %s1240_s22 = smov 8  }
   0xd   :  { %29 = dma.hbm_to_vmem [thread:$0]  %s1673_s2, 2048, %s24_s19, [#allocation3], %s1239_s21, %s1239_s21, %s1240_s22  }
   0xe   :  { %1232 = dma.done.wait [#allocation3], 2048  }
   0xf   :  { %1233 = vsyncadd [#allocation3], 4294965248  ;;  %v1241_v0 = vmov 0   ;;  %v37_v1 = vld [vmem:[%s1671_s0] sm:$0xff]  ;;  %v38_v2 = vld [vmem:[%s1671_s0 + $0x8] sm:$0xff] }
  0x10   :  { %1170 = vset.pattern.permute.xlu0 %v1241_v0  ;;  %1171 = vset.pattern.permute.xlu1 %v1241_v0  ;;  %v766_v3 = vld [vmem:[%s1672_s1] sm:$0xff]  ;;  %v767_v4 = vld [vmem:[%s1672_s1 + $0x8] sm:$0xff]  ;;  %v66_v5 = vld [vmem:[#allocation2 + $0x78] sm:$0xff] }
  0x11   :  { %40 = vperm.xlu0 %1170, %v37_v1   ;;  %769 = vperm.xlu1 %1171, %v766_v3   ;;  %v65_v6 = vld [vmem:[#allocation2 + $0x70] sm:$0xff]  ;;  %v1294_v7 = vand.u32 4294901760, %v66_v5  ;;  %v64_v9 = vld [vmem:[#allocation2 + $0x68] sm:$0xff]  ;;  %v63_v10 = vld [vmem:[#allocation2 + $0x60] sm:$0xff] }
  0x12   :  { %v1296_v8 = vand.u32 4294901760, %v65_v6  ;;  %v62_v11 = vld [vmem:[#allocation2 + $0x58] sm:$0xff]  ;;  %v1298_v12 = vand.u32 4294901760, %v64_v9  ;;  %v1300_v13 = vand.u32 4294901760, %v63_v10  ;;  %v61_v15 = vld [vmem:[#allocation2 + $0x50] sm:$0xff]  ;;  %v60_v16 = vld [vmem:[#allocation2 + $0x48] sm:$0xff] }
  0x13   :  { %v1302_v14 = vand.u32 4294901760, %v62_v11  ;;  %v59_v17 = vld [vmem:[#allocation2 + $0x40] sm:$0xff]  ;;  %v1305_v18 = vsub.f32 %v66_v5, %v1294_v7  ;;  %952 = vmatprep.subr.mxu0 %v1294_v7  ;;  %v1311_v20 = vand.u32 4294901760, %v61_v15  ;;  %v1313_v21 = vand.u32 4294901760, %v60_v16  ;;  %v58_v38 = vld [vmem:[#allocation2 + $0x38] sm:$0xff]  ;;  %v57_v39 = vld [vmem:[#allocation2 + $0x30] sm:$0xff] }
  0x14   :  { %v1308_v19 = vsub.f32 %v65_v6, %v1296_v8  ;;  %v1316_v22 = vsub.f32 %v64_v9, %v1298_v12  ;;  %v1319_v23 = vsub.f32 %v63_v10, %v1300_v13  ;;  %v1324_v25 = vand.u32 4294901760, %v59_v17  ;;  %953 = vmatpush3.msra.mxu0 %v1294_v7  ;;  %v56_v43 = vld [vmem:[#allocation2 + $0x28] sm:$0xff]  ;;  %v55_v45 = vld [vmem:[#allocation2 + $0x20] sm:$0xff]  ;;  %v54_v53 = vld [vmem:[#allocation2 + $0x18] sm:$0xff] }
  0x15   :  { %43 = vperm.xlu0 %1170, %v38_v2   ;;  %772 = vperm.xlu1 %1171, %v767_v4   ;;  %v1322_v24 = vsub.f32 %v62_v11, %v1302_v14  ;;  %v1327_v26 = vand.u32 4294901760, %v1305_v18  ;;  %v1334_v28 = vsub.f32 %v61_v15, %v1311_v20  ;;  %v1344_v31 = vsub.f32 %v60_v16, %v1313_v21  ;;  %v53_v59 = vld [vmem:[#allocation2 + $0x10] sm:$0xff]  ;;  %v52_v1 = vld [vmem:[#allocation2 + $0x8] sm:$0xff]  ;;  %v51_v9 = vld [vmem:[#allocation2] sm:$0xff] }
  0x16   :  { %v1330_v27 = vand.u32 4294901760, %v1308_v19  ;;  %v1337_v29 = vand.u32 4294901760, %v1316_v22  ;;  %v1340_v30 = vand.u32 4294901760, %v1319_v23  ;;  %954 = vmatprep.subr.mxu0 %v1296_v8  ;;  %v1361_v37 = vsub.f32 %v59_v17, %v1324_v25 }
  0x17   :  { %v172_v32 = vsub.f32 %v1305_v18, %v1327_v26  ;;  %v1351_v34 = vand.u32 4294901760, %v1322_v24  ;;  %955 = vmatpush3.msra.mxu0 %v1296_v8  ;;  %v1357_v36 = vand.u32 4294901760, %v1334_v28  ;;  %v1367_v44 = vand.u32 4294901760, %v1344_v31 }
  0x18   :  { %v179_v33 = vsub.f32 %v1308_v19, %v1330_v27  ;;  %v186_v35 = vsub.f32 %v1316_v22, %v1337_v29  ;;  %956 = vmatprep.subr.mxu0 %v1298_v12  ;;  %v193_v42 = vsub.f32 %v1319_v23, %v1340_v30  ;;  %v1373_v48 = vand.u32 4294901760, %v58_v38 }
  0x19   :  { %v173_v40 = vand.u32 4294901760, %v172_v32  ;;  %957 = vmatpush3.msra.mxu0 %v1298_v12  ;;  %v200_v47 = vsub.f32 %v1322_v24, %v1351_v34  ;;  %v1375_v49 = vand.u32 4294901760, %v57_v39  ;;  %v207_v50 = vsub.f32 %v1334_v28, %v1357_v36 }
  0x1a   :  { %v180_v41 = vand.u32 4294901760, %v179_v33  ;;  %958 = vmatprep.subr.mxu0 %v1300_v13  ;;  %v187_v46 = vand.u32 4294901760, %v186_v35  ;;  %v1380_v51 = vand.u32 4294901760, %v1361_v37  ;;  %v1383_v52 = vand.u32 4294901760, %v56_v43 }
  0x1b   :  { %987 = vmatprep.subr.mxu1 %v173_v40  ;;  %959 = vmatpush3.msra.mxu0 %v1300_v13  ;;  %v194_v54 = vand.u32 4294901760, %v193_v42  ;;  %v1386_v55 = vsub.f32 %v58_v38, %v1373_v48  ;;  %v1390_v56 = vsub.f32 %v57_v39, %v1375_v49  ;;  %v1392_v57 = vand.u32 4294901760, %v55_v45 }
  0x1c   :  { %988 = vmatpush3.msra.mxu1 %v173_v40  ;;  %960 = vmatprep.subr.mxu0 %v1302_v14  ;;  %v214_v58 = vsub.f32 %v1344_v31, %v1367_v44  ;;  %v201_v60 = vand.u32 4294901760, %v200_v47  ;;  %v1402_v62 = vsub.f32 %v56_v43, %v1383_v52  ;;  %v1404_v63 = vand.u32 4294901760, %v54_v53 }
  0x1d   :  { %989 = vmatprep.subr.mxu1 %v180_v41  ;;  %961 = vmatpush3.msra.mxu0 %v1302_v14  ;;  %v1398_v61 = vand.u32 4294901760, %v1386_v55  ;;  %v221_v0 = vsub.f32 %v1361_v37, %v1380_v51  ;;  %v208_v2 = vand.u32 4294901760, %v207_v50  ;;  %v1410_v3 = vand.u32 4294901760, %v1390_v56 }
  0x1e   :  { %990 = vmatpush3.msra.mxu1 %v180_v41  ;;  %962 = vmatprep.subr.mxu0 %v1311_v20  ;;  %v1414_v4 = vsub.f32 %v55_v45, %v1392_v57  ;;  %v1416_v5 = vand.u32 4294901760, %v53_v59  ;;  %v215_v6 = vand.u32 4294901760, %v214_v58  ;;  %v1422_v11 = vand.u32 4294901760, %v1402_v62 }
  0x1f   :  { %991 = vmatprep.subr.mxu1 %v187_v46  ;;  %963 = vmatpush3.msra.mxu0 %v1311_v20  ;;  %v228_v10 = vsub.f32 %v1386_v55, %v1398_v61  ;;  %v1426_v15 = vsub.f32 %v54_v53, %v1404_v63  ;;  %v1428_v16 = vand.u32 4294901760, %v52_v1  ;;  %v222_v17 = vand.u32 4294901760, %v221_v0 }
  0x20   :  { %992 = vmatpush3.msra.mxu1 %v187_v46  ;;  %964 = vmatprep.subr.mxu0 %v1313_v21  ;;  %v235_v32 = vsub.f32 %v1390_v56, %v1410_v3  ;;  %v1434_v33 = vand.u32 4294901760, %v1414_v4  ;;  %v1438_v35 = vsub.f32 %v53_v59, %v1416_v5  ;;  %v1440_v38 = vand.u32 4294901760, %v51_v9 }
  0x21   :  { %993 = vmatprep.subr.mxu1 %v194_v54  ;;  %965 = vmatpush3.msra.mxu0 %v1313_v21  ;;  %v229_v39 = vand.u32 4294901760, %v228_v10  ;;  %v242_v40 = vsub.f32 %v1402_v62, %v1422_v11  ;;  %v1446_v41 = vand.u32 4294901760, %v1426_v15  ;;  %v1450_v42 = vsub.f32 %v52_v1, %v1428_v16 }
  0x22   :  { %994 = vmatpush3.msra.mxu1 %v194_v54  ;;  %966 = vmatprep.subr.mxu0 %v1324_v25  ;;  %v236_v43 = vand.u32 4294901760, %v235_v32  ;;  %v249_v45 = vsub.f32 %v1414_v4, %v1434_v33  ;;  %v1456_v46 = vand.u32 4294901760, %v1438_v35  ;;  %v1460_v47 = vsub.f32 %v51_v9, %v1440_v38 }
  0x23   :  { %995 = vmatprep.subr.mxu1 %v201_v60  ;;  %967 = vmatpush3.msra.mxu0 %v1324_v25  ;;  %v243_v50 = vand.u32 4294901760, %v242_v40  ;;  %v256_v53 = vsub.f32 %v1426_v15, %v1446_v41  ;;  %v1466_v54 = vand.u32 4294901760, %v1450_v42 }
  0x24   :  { %996 = vmatpush3.msra.mxu1 %v201_v60  ;;  %968 = vmatprep.subr.mxu0 %v1373_v48  ;;  %v250_v58 = vand.u32 4294901760, %v249_v45  ;;  %v263_v59 = vsub.f32 %v1438_v35, %v1456_v46  ;;  %v1473_v60 = vand.u32 4294901760, %v1460_v47  ;;  %v1242_v45 = vmov 0.0  }
  0x25   :  { %997 = vmatprep.subr.mxu1 %v208_v2  ;;  %969 = vmatpush3.msra.mxu0 %v1373_v48  ;;  %v257_v0 = vand.u32 4294901760, %v256_v53  ;;  %v270_v1 = vsub.f32 %v1450_v42, %v1466_v54  ;;  %v1243_v53 = vmov 1.0  }
  0x26   :  { %998 = vmatpush3.msra.mxu1 %v208_v2  ;;  %970 = vmatprep.subr.mxu0 %v1375_v49  ;;  %v264_v2 = vand.u32 4294901760, %v263_v59 }
  0x27   :  { %999 = vmatprep.subr.mxu1 %v215_v6  ;;  %971 = vmatpush3.msra.mxu0 %v1375_v49  ;;  %v271_v9 = vand.u32 4294901760, %v270_v1 }
  0x28   :  { %1000 = vmatpush3.msra.mxu1 %v215_v6  ;;  %972 = vmatprep.subr.mxu0 %v1383_v52  ;;  %v277_v6 = vsub.f32 %v1460_v47, %v1473_v60 }
  0x29   :  { %1001 = vmatprep.subr.mxu1 %v222_v17  ;;  %973 = vmatpush3.msra.mxu0 %v1383_v52 }
  0x2a   :  { %1002 = vmatpush3.msra.mxu1 %v222_v17  ;;  %974 = vmatprep.subr.mxu0 %v1392_v57  ;;  %v278_v10 = vand.u32 4294901760, %v277_v6  ;;  %v35_v17 = vlaneseq }
  0x2b   :  { %1003 = vmatprep.subr.mxu1 %v229_v39  ;;  %975 = vmatpush3.msra.mxu0 %v1392_v57 }
  0x2c   :  { %1004 = vmatpush3.msra.mxu1 %v229_v39  ;;  %976 = vmatprep.subr.mxu0 %v1404_v63  ;;  %v1488_v32 = vand.u32 127, %v35_v17  ;;  %v843_v39 = vld [vmem:[%s1674_s3] ss:$0 sm:$0xff]  ;;  %s1244_s3 = smov [#allocation5]  }
  0x2d   :  { %1005 = vmatprep.subr.mxu1 %v236_v43  ;;  %977 = vmatpush3.msra.mxu0 %v1404_v63  ;;  %s809_s7 = sshll.u32 %s1244_s3, 4  ;;  %s810_s7 = int_to_ptr.vmem [resolvable:$true] %s809_s7 }
  0x2e   :  { %1006 = vmatpush3.msra.mxu1 %v236_v43  ;;  %978 = vmatprep.subr.mxu0 %v1416_v5  ;;  %s1192_s8 = scalar_lea.vmem %s810_s7, 256  ;;  %p1197_p6 = scmp.lt.s32.totalorder %s810_s7, %s810_s7 }
  0x2f   :  { %1007 = vmatprep.subr.mxu1 %v243_v50  ;;  %979 = vmatpush3.msra.mxu0 %v1416_v5  ;;  %p1193_p5 = scmp.ne.s32.totalorder %s810_s7, %s1192_s8  ;;  %p1198_p7 = scmp.lt.s32.totalorder %s1192_s8, %s1192_s8 }
  0x30   :  { %1008 = vmatpush3.msra.mxu1 %v243_v50  ;;  %980 = vmatprep.subr.mxu0 %v1428_v16 }
  0x31   :  { %1009 = vmatprep.subr.mxu1 %v250_v58  ;;  %981 = vmatpush3.msra.mxu0 %v1428_v16  ;;  %p1199_p8 = por %p1198_p7, %p1197_p6 }
  0x32   :  { %1010 = vmatpush3.msra.mxu1 %v250_v58  ;;  %982 = vmatprep.subr.mxu0 %v1440_v38 }
  0x33   :  { %1011 = vmatprep.subr.mxu1 %v257_v0  ;;  %983 = vmatpush3.msra.mxu0 %v1440_v38  ;;  %p1200_p9 = pnand %p1199_p8, %p1193_p5 }
  0x34   :  { %1012 = vmatpush3.msra.mxu1 %v257_v0  ;;  %1022 = vmatprep.subr.mxu0 %v1305_v18 }
  0x35   :  { %1013 = vmatprep.subr.mxu1 %v264_v2 }
  0x36   :  { %1014 = vmatpush3.msra.mxu1 %v264_v2 }
  0x37   :  { %1015 = vmatprep.subr.mxu1 %v271_v9 }
  0x38   :  { %1016 = vmatpush3.msra.mxu1 %v271_v9 }
  0x39   :  { %1017 = vmatprep.subr.mxu1 %v278_v10 }
  0x3a   :  { %1018 = vmatpush3.msra.mxu1 %v278_v10 }
  0x3b   :  { %1057 = vmatprep.subr.mxu1 %v1294_v7 }
  0x8c   :  { %v41_v40 = vpop.permute.xlu0 %40 }
  0x8d   :  { %vm1494_vm0 = vcmp.eq.s32.totalorder %v1488_v32, %v41_v40 }
  0x8e   :  { %v835_v50 = vsel %vm1494_vm0, 1.0, %v1242_v45  ;;  %1019 = vmatprep.mubr.msk.f32.mxu1 %vm1494_vm0, %v1243_v53  ;;  %v760_v58 = vsel %vm1494_vm0, %v843_v39, 0.0 }
  0x8f   :  { %v149_v59 = vsub.f32 %v835_v50, %v835_v50  ;;  %762 = vadd.xlane.f32.xlu0 %v760_v58 }
  0x90   :  { %v44_v0 = vpop.permute.xlu0 %43 }
  0x91   :  { %vm1506_vm1 = vcmp.eq.s32.totalorder %v1488_v32, %v44_v0  ;;  %v150_v2 = vand.u32 4294901760, %v149_v59 }
  0x92   :  { %v836_v6 = vsel %vm1506_vm1, 1.0, %v1242_v45  ;;  %1020 = vmatmul.mubr.msk.f32.vlgmr.msra.gmra.mxu1 %vm1506_vm1, %v1243_v53  ;;  %v761_v9 = vsel %vm1506_vm1, %v843_v39, 0.0 }
  0x93   :  { %v1517_v10 = vsub.f32 %v836_v6, %v836_v6  ;;  %1058 = vmatpush3.msra.mxu1 %v1294_v7  ;;  %764 = vadd.xlane.f32.xlu1 %v761_v9  ;;  %v151_v17 = vsub.f32 %v149_v59, %v150_v2 }
  0x94   :  { %1059 = vmatprep.subr.mxu1 %v1296_v8  ;;  %1089 = vmatprep.mubr.f32.mxu1 %v150_v2 }
  0x95   :  { %1060 = vmatpush3.msra.mxu1 %v1296_v8  ;;  %v152_v40 = vand.u32 4294901760, %v151_v17  ;;  %v160_v45 = vand.u32 4294901760, %v1517_v10 }
  0x96   :  { %1061 = vmatprep.subr.mxu1 %v1298_v12 }
  0x97   :  { %1062 = vmatpush3.msra.mxu1 %v1298_v12  ;;  %984 = vmatprep.mubr.f32.mxu0 %v152_v40  ;;  %v161_v39 = vsub.f32 %v1517_v10, %v160_v45 }
  0x98   :  { %1063 = vmatprep.subr.mxu1 %v1300_v13 }
  0x99   :  { %1064 = vmatpush3.msra.mxu1 %v1300_v13  ;;  %v162_v50 = vand.u32 4294901760, %v161_v39 }
  0x9a   :  { %1065 = vmatprep.subr.mxu1 %v1302_v14 }
  0x9b   :  { %1066 = vmatpush3.msra.mxu1 %v1302_v14  ;;  %985 = vmatmul.mubr.f32.vlgmr.msra.gmra.mxu0 %v162_v50 }
  0x9c   :  { %1023 = vmatpush3.msra.mxu0 %v1305_v18  ;;  %1067 = vmatprep.subr.mxu1 %v1311_v20 }
  0x9d   :  { %1024 = vmatprep.subr.mxu0 %v1308_v19  ;;  %1054 = vmatprep.mubr.f32.mxu0 %v149_v59 }
  0x9e   :  { %1068 = vmatpush3.msra.mxu1 %v1311_v20  ;;  %1025 = vmatpush3.msra.mxu0 %v1308_v19 }
  0x9f   :  { %1069 = vmatprep.subr.mxu1 %v1313_v21  ;;  %1026 = vmatprep.subr.mxu0 %v1316_v22 }
  0xa0   :  { %1070 = vmatpush3.msra.mxu1 %v1313_v21  ;;  %1027 = vmatpush3.msra.mxu0 %v1316_v22 }
  0xa1   :  { %1071 = vmatprep.subr.mxu1 %v1324_v25  ;;  %1028 = vmatprep.subr.mxu0 %v1319_v23 }
  0xa2   :  { %1072 = vmatpush3.msra.mxu1 %v1324_v25  ;;  %1029 = vmatpush3.msra.mxu0 %v1319_v23 }
  0xa3   :  { %1073 = vmatprep.subr.mxu1 %v1373_v48  ;;  %1030 = vmatprep.subr.mxu0 %v1322_v24 }
  0xa4   :  { %1074 = vmatpush3.msra.mxu1 %v1373_v48  ;;  %1031 = vmatpush3.msra.mxu0 %v1322_v24 }
  0xa5   :  { %1075 = vmatprep.subr.mxu1 %v1375_v49  ;;  %1032 = vmatprep.subr.mxu0 %v1334_v28 }
  0xa6   :  { %1076 = vmatpush3.msra.mxu1 %v1375_v49  ;;  %1033 = vmatpush3.msra.mxu0 %v1334_v28  ;;  %v770_v28 = vpop.permute.xlu1 %769 }
  0xa7   :  { %1077 = vmatprep.subr.mxu1 %v1383_v52  ;;  %1034 = vmatprep.subr.mxu0 %v1344_v31  ;;  %vm774_vm2 = vcmp.eq.s32.totalorder %v1488_v32, %v770_v28 }
  0xa8   :  { %1078 = vmatpush3.msra.mxu1 %v1383_v52  ;;  %1035 = vmatpush3.msra.mxu0 %v1344_v31 }
  0xa9   :  { %1079 = vmatprep.subr.mxu1 %v1392_v57  ;;  %1036 = vmatprep.subr.mxu0 %v1361_v37 }
  0xaa   :  { %1080 = vmatpush3.msra.mxu1 %v1392_v57  ;;  %1037 = vmatpush3.msra.mxu0 %v1361_v37 }
  0xab   :  { %1081 = vmatprep.subr.mxu1 %v1404_v63  ;;  %1038 = vmatprep.subr.mxu0 %v1386_v55 }
  0xac   :  { %1082 = vmatpush3.msra.mxu1 %v1404_v63  ;;  %1039 = vmatpush3.msra.mxu0 %v1386_v55 }
  0xad   :  { %1083 = vmatprep.subr.mxu1 %v1416_v5  ;;  %1040 = vmatprep.subr.mxu0 %v1390_v56 }
  0xae   :  { %1084 = vmatpush3.msra.mxu1 %v1416_v5  ;;  %1041 = vmatpush3.msra.mxu0 %v1390_v56 }
  0xaf   :  { %1085 = vmatprep.subr.mxu1 %v1428_v16  ;;  %1042 = vmatprep.subr.mxu0 %v1402_v62 }
  0xb0   :  { %1086 = vmatpush3.msra.mxu1 %v1428_v16  ;;  %1043 = vmatpush3.msra.mxu0 %v1402_v62 }
  0xb1   :  { %1087 = vmatprep.subr.mxu1 %v1440_v38  ;;  %1044 = vmatprep.subr.mxu0 %v1414_v4 }
  0xb2   :  { %1088 = vmatpush3.msra.mxu1 %v1440_v38  ;;  %1045 = vmatpush3.msra.mxu0 %v1414_v4 }
  0xb3   :  { %1090 = vmatmul.mubr.f32.vlgmr.msra.gmra.mxu1 %v160_v45  ;;  %1127 = vmatprep.subr.mxu1 %v1294_v7 }
  0xb4   :  { %1046 = vmatprep.subr.mxu0 %v1426_v15  ;;  %1128 = vmatpush3.msra.mxu1 %v1294_v7 }
  0xb5   :  { %1159 = vmatprep.mubr.msk.f32.mxu1 %vm1494_vm0, %v1243_v53  ;;  %1047 = vmatpush3.msra.mxu0 %v1426_v15 }
  0xb6   :  { %1129 = vmatprep.subr.mxu1 %v1296_v8  ;;  %1048 = vmatprep.subr.mxu0 %v1438_v35 }
  0xb7   :  { %1130 = vmatpush3.msra.mxu1 %v1296_v8  ;;  %1049 = vmatpush3.msra.mxu0 %v1438_v35 }
  0xb8   :  { %1131 = vmatprep.subr.mxu1 %v1298_v12  ;;  %1050 = vmatprep.subr.mxu0 %v1450_v42 }
  0xb9   :  { %1132 = vmatpush3.msra.mxu1 %v1298_v12  ;;  %1051 = vmatpush3.msra.mxu0 %v1450_v42 }
  0xba   :  { %1133 = vmatprep.subr.mxu1 %v1300_v13  ;;  %1052 = vmatprep.subr.mxu0 %v1460_v47 }
  0xbb   :  { %1134 = vmatpush3.msra.mxu1 %v1300_v13  ;;  %1053 = vmatpush3.msra.mxu0 %v1460_v47 }
  0xbc   :  { %1135 = vmatprep.subr.mxu1 %v1302_v14  ;;  %1055 = vmatmul.mubr.f32.vlgmr.msra.gmra.mxu0 %v1517_v10 }
  0xbd   :  { %1092 = vmatprep.subr.mxu0 %v1327_v26  ;;  %1136 = vmatpush3.msra.mxu1 %v1302_v14 }
  0xbe   :  { %1093 = vmatpush3.msra.mxu0 %v1327_v26  ;;  %1124 = vmatprep.mubr.msk.f32.mxu0 %vm1494_vm0, %v1243_v53 }
  0xbf   :  { %1137 = vmatprep.subr.mxu1 %v1311_v20  ;;  %1094 = vmatprep.subr.mxu0 %v1330_v27 }
  0xc0   :  { %1138 = vmatpush3.msra.mxu1 %v1311_v20  ;;  %1095 = vmatpush3.msra.mxu0 %v1330_v27 }
  0xc1   :  { %1139 = vmatprep.subr.mxu1 %v1313_v21  ;;  %1096 = vmatprep.subr.mxu0 %v1337_v29 }
  0xc2   :  { %1140 = vmatpush3.msra.mxu1 %v1313_v21  ;;  %1097 = vmatpush3.msra.mxu0 %v1337_v29 }
  0xc3   :  { %1141 = vmatprep.subr.mxu1 %v1324_v25  ;;  %1098 = vmatprep.subr.mxu0 %v1340_v30 }
  0xc4   :  { %1142 = vmatpush3.msra.mxu1 %v1324_v25  ;;  %1099 = vmatpush3.msra.mxu0 %v1340_v30 }
  0xc5   :  { %1143 = vmatprep.subr.mxu1 %v1373_v48  ;;  %1100 = vmatprep.subr.mxu0 %v1351_v34 }
  0xc6   :  { %1144 = vmatpush3.msra.mxu1 %v1373_v48  ;;  %1101 = vmatpush3.msra.mxu0 %v1351_v34  ;;  %v773_v48 = vpop.permute.xlu1 %772 }
  0xc7   :  { %1145 = vmatprep.subr.mxu1 %v1375_v49  ;;  %1102 = vmatprep.subr.mxu0 %v1357_v36  ;;  %vm775_vm3 = vcmp.eq.s32.totalorder %v1488_v32, %v773_v48 }
  0xc8   :  { %1146 = vmatpush3.msra.mxu1 %v1375_v49  ;;  %1103 = vmatpush3.msra.mxu0 %v1357_v36 }
  0xc9   :  { %1147 = vmatprep.subr.mxu1 %v1383_v52  ;;  %1104 = vmatprep.subr.mxu0 %v1367_v44 }
  0xca   :  { %1148 = vmatpush3.msra.mxu1 %v1383_v52  ;;  %1105 = vmatpush3.msra.mxu0 %v1367_v44 }
  0xcb   :  { %1149 = vmatprep.subr.mxu1 %v1392_v57  ;;  %1106 = vmatprep.subr.mxu0 %v1380_v51 }
  0xcc   :  { %1150 = vmatpush3.msra.mxu1 %v1392_v57  ;;  %1107 = vmatpush3.msra.mxu0 %v1380_v51 }
  0xcd   :  { %1151 = vmatprep.subr.mxu1 %v1404_v63  ;;  %1108 = vmatprep.subr.mxu0 %v1398_v61 }
  0xce   :  { %1152 = vmatpush3.msra.mxu1 %v1404_v63  ;;  %1109 = vmatpush3.msra.mxu0 %v1398_v61 }
  0xcf   :  { %1153 = vmatprep.subr.mxu1 %v1416_v5  ;;  %1110 = vmatprep.subr.mxu0 %v1410_v3 }
  0xd0   :  { %1154 = vmatpush3.msra.mxu1 %v1416_v5  ;;  %1111 = vmatpush3.msra.mxu0 %v1410_v3 }
  0xd1   :  { %1155 = vmatprep.subr.mxu1 %v1428_v16  ;;  %1112 = vmatprep.subr.mxu0 %v1422_v11 }
  0xd2   :  { %1156 = vmatpush3.msra.mxu1 %v1428_v16  ;;  %1113 = vmatpush3.msra.mxu0 %v1422_v11 }
  0xd3   :  { %1157 = vmatprep.subr.mxu1 %v1440_v38  ;;  %1114 = vmatprep.subr.mxu0 %v1434_v33 }
  0xd4   :  { %1158 = vmatpush3.msra.mxu1 %v1440_v38  ;;  %1115 = vmatpush3.msra.mxu0 %v1434_v33 }
  0xd5   :  { %1160 = vmatmul.mubr.msk.f32.vlgmr.msra.gmra.mxu1 %vm1506_vm1, %v1243_v53  ;;  %1116 = vmatprep.subr.mxu0 %v1446_v41 }
  0xd6   :  { %1117 = vmatpush3.msra.mxu0 %v1446_v41 }
  0xd7   :  { %1118 = vmatprep.subr.mxu0 %v1456_v46 }
  0xd8   :  { %1119 = vmatpush3.msra.mxu0 %v1456_v46 }
  0xd9   :  { %1120 = vmatprep.subr.mxu0 %v1466_v54 }
  0xda   :  { %1121 = vmatpush3.msra.mxu0 %v1466_v54 }
  0xdb   :  { %1122 = vmatprep.subr.mxu0 %v1473_v60 }
  0xdc   :  { %1123 = vmatpush3.msra.mxu0 %v1473_v60 }
  0xdd   :  { %1125 = vmatmul.mubr.msk.f32.vlgmr.msra.gmra.mxu0 %vm1506_vm1, %v1243_v53 }
 0x152   :  { %v1021_v8 = vpop.f32.mrf.mxu1 }
 0x154   :  { %v315_v14 = vpop.f32.mrf.mxu1 }
 0x15b   :  { %v986_v7 = vpop.f32.mrf.mxu0 }
 0x15c   :  { %v322_v18 = vadd.f32 %v1021_v8, %v986_v7 }
 0x15d   :  { %v154_v12 = vpop.f32.mrf.mxu0 }
 0x15e   :  { %v316_v21 = vadd.f32 %v315_v14, %v154_v12 }
 0x173   :  { %v1091_v19 = vpop.f32.mrf.mxu1 }
 0x175   :  { %v521_v24 = vpop.f32.mrf.mxu1 }
 0x17c   :  { %v1056_v13 = vpop.f32.mrf.mxu0 }
 0x17d   :  { %v433_v22 = vadd.f32 %v1056_v13, %v322_v18 }
 0x17e   :  { %v425_v20 = vpop.f32.mrf.mxu0 }
 0x17f   :  { %v426_v23 = vadd.f32 %v425_v20, %v316_v21  ;;  %v530_v25 = vadd.f32 %v1091_v19, %v433_v22 }
 0x181   :  { %v522_v30 = vadd.f32 %v521_v24, %v426_v23 }
 0x195   :  { %v1161_v26 = vpop.f32.mrf.mxu1 }
 0x197   :  { %v741_v37 = vpop.f32.mrf.mxu1 }
 0x19d   :  { %v1126_v27 = vpop.f32.mrf.mxu0 }
 0x19e   :  { %v655_v29 = vadd.f32 %v1126_v27, %v530_v25 }
 0x19f   :  { %v648_v31 = vpop.f32.mrf.mxu0 }
 0x1a0   :  { %v649_v34 = vadd.f32 %v648_v31, %v522_v30  ;;  %v748_v36 = vadd.f32 %v1161_v26, %v655_v29 }
 0x1a2   :  { %v742_v44 = vadd.f32 %v741_v37, %v649_v34  ;;  %752 = vst [vmem:[#allocation5 + $0x8] sm:$0xff] %v748_v36  ;;  %v777_v51 = vsel %vm775_vm3, %v748_v36, 0.0 }
 0x1a4   :  { %v776_v49 = vsel %vm774_vm2, %v742_v44, 0.0  ;;  %751 = vst [vmem:[#allocation5] sm:$0xff] %v742_v44 }
 0x1a5   :  { %778 = vadd.xlane.f32.xlu0 %v776_v49 }
 0x1a9   :  { %780 = vadd.xlane.f32.xlu0 %v777_v51 }
 0x1aa   :  { %1203 = shalt.err (!%p1200_p9)
}
 0x1ab   :  { %815 = dma.vmem_to_hbm [thread:$0]  %s810_s7, 256, %s1675_s4, [#allocation4], %s1239_s21, %s1239_s21, %s1240_s22   ;;  %v763_v52 = vpop.xlane.xlu0 %762  ;;  %v765_v56 = vpop.xlane.xlu1 %764  ;;  %vm802_vm4 = vcmask 0  }
 0x1ac   :  { %s1245_s11 = smov [#allocation6]  }
 0x1ad   :  { %s822_s12 = sshll.u32 %s1245_s11, 4  ;;  %s823_s12 = int_to_ptr.vmem [resolvable:$true] %s822_s12 }
 0x1ae   :  { %s1212_s13 = scalar_lea.vmem %s823_s12, 16  ;;  %s1216_s4 = scalar_lea.vmem %s823_s12, 32 }
 0x1af   :  { %p1213_p10 = scmp.ne.s32.totalorder %s823_s12, %s1212_s13  ;;  %p1217_p11 = scmp.lt.s32.totalorder %s823_s12, %s823_s12 }
 0x1b0   :  { %p1218_p12 = scmp.lt.s32.totalorder %s1216_s4, %s1212_s13 }
 0x1b2   :  { %p1219_p13 = por %p1218_p12, %p1217_p11 }
 0x1b4   :  { %p1220_p0 = pnand %p1219_p13, %p1213_p10 }
 0x22e   :  { %v779_v55 = vpop.xlane.xlu0 %778 }
 0x22f   :  { %v791_v61 = vsub.f32 %v763_v52, %v779_v55 }
 0x232   :  { %v781_v57 = vpop.xlane.xlu0 %780 }
 0x233   :  { %v792_v62 = vsub.f32 %v765_v56, %v781_v57 }
 0x235   :  { %v795_v63 = vadd.f32 %v792_v62, %v791_v61 }
 0x237   :  { %v796_v3 = vrot.slane %v795_v63, 4 }
 0x239   :  { %v797_v4 = vadd.f32 %v796_v3, %v795_v63 }
 0x23b   :  { %v798_v5 = vrot.slane %v797_v4, 2 }
 0x23d   :  { %v799_v11 = vadd.f32 %v798_v5, %v797_v4 }
 0x23f   :  { %v800_v15 = vrot.slane %v799_v11, 1 }
 0x241   :  { %v801_v16 = vadd.f32 %v800_v15, %v799_v11 }
 0x243   :  { %803 = vst.msk [vmem:[#allocation6] sm:$0x1] %vm802_vm4, %v801_v16 }
 0x244   :  { %1223 = shalt.err (!%p1220_p0)
}
 0x245   :  { %825 = dma.vmem_to_hbm [thread:$0]  %s823_s12, 16, %s1676_s5, [#allocation7]  }
 0x246   :  { %1234 = dma.done.wait [#allocation4], 256  }
 0x247   :  { %1235 = vsyncadd [#allocation4], 4294967040 }
 0x248   :  { %1236 = dma.done.wait [#allocation7], 16  }
 0x249   :  { %1237 = vsyncadd [#allocation7], 4294967280 }
 0x24a   :  { %832 = vsyncpa [#allocation3], 1 }
 0x24b   :  { %833 = vsyncpa [#allocation4], 1 }
 0x24c   :  { %834 = vsyncpa [#allocation7], 1 }

</bundles_post_ra>
